<compile_context>
chip_gen: v5e
topology: v5e:2x2
jax: 0.10.0
libtpu: 0.0.40
codegen_flags: <defaults>
</compile_context>

<pallas_src>
import functools

import jax
import jax.numpy as jnp
from jax.experimental import pallas as pl
from jax.experimental.pallas import tpu as pltpu

EPS = 1e-5   # PyTorch BatchNorm1d default
LANE = 128

try:                                           # physical VMEM of the local device
    _VMEM_PHYS = int(pltpu.get_tpu_info().vmem_capacity_bytes)
except Exception:                              # pragma: no cover - conservative default
    _VMEM_PHYS = 64 * 1024 * 1024              # v7x-sized fallback


def _round_up(x, m):
    return (x + m - 1) // m * m


# --------------------------------------------------------------------------- kernel
def _resblock_kernel(*refs, stride, TL, Lout, has_sc_conv):
    """One (batch element, Lout tile) per grid step.

    refs (conv-shortcut variant):
      xm_ref  : (stride*TL, Cin_p)   main input rows of this tile's conv window
      xh_ref  : (8, Cin_p)           halo rows that follow the main block
      w1_ref  : (3*Cin_p, Cout_p)    conv1 weights, tap-stacked, BN1 scale folded in
      w2_ref  : (3*Cout_p, Cout_p)   conv2 weights, tap-stacked, BN2 scale folded in
      ws_ref  : (Cin_p, Cout_p)      1x1 shortcut weights, BN_s scale folded in
                                     (absent in the identity-shortcut variant)
      b1_ref  : (1, Cout_p)          BN1 shift (f32)
      b2s_ref : (1, Cout_p)          BN2 shift (+ shortcut-BN shift if present) (f32)
      o_ref   : (TL, Cout_p)
      xwin    : (stride*TL + 8, Cin_p) VMEM scratch holding the stitched window
    """
    if has_sc_conv:
        xm_ref, xh_ref, w1_ref, w2_ref, ws_ref, b1_ref, b2s_ref, o_ref, xwin = refs
    else:
        xm_ref, xh_ref, w1_ref, w2_ref, b1_ref, b2s_ref, o_ref, xwin = refs

    j = pl.program_id(1)
    ML = stride * TL

    # Stitch the overlapping conv window (main rows + 8 halo rows) into one VMEM
    # slab so every tap and the shortcut is a cheap view of a single buffer.
    xwin[pl.ds(0, ML), :] = xm_ref[...]
    xwin[pl.ds(ML, 8), :] = xh_ref[...]

    # ---- conv1 (k=3, stride) + bn1 (scale folded) + relu, TL+2 halo rows --------
    if stride == 1:
        taps1 = [xwin[pl.ds(t, TL + 2), :] for t in range(3)]
    else:
        taps1 = [xwin[pl.ds(t, TL + 2, stride=stride), :] for t in range(3)]
    im1 = jnp.concatenate(taps1, axis=1)                       # (TL+2, 3*Cin_p)
    h1 = jnp.dot(im1, w1_ref[...], preferred_element_type=jnp.float32)
    h1 = jnp.maximum(h1 + b1_ref[...], 0.0)

    # zero halo rows outside [0, Lout) -- this IS conv2's zero padding
    g = j * TL - 1 + jax.lax.broadcasted_iota(jnp.int32, (TL + 2, 1), 0)
    h1 = jnp.where((g >= 0) & (g < Lout), h1, 0.0).astype(w2_ref.dtype)

    # ---- conv2 (k=3, stride=1, pad=1) + bn2 (scale folded) ----------------------
    im2 = jnp.concatenate([h1[t:t + TL, :] for t in range(3)], axis=1)
    acc2 = jnp.dot(im2, w2_ref[...], preferred_element_type=jnp.float32)

    # ---- shortcut ----------------------------------------------------------------
    if stride == 1:
        x_sc = xwin[pl.ds(stride + 1, TL), :]
    else:
        x_sc = xwin[pl.ds(stride + 1, TL, stride=stride), :]
    if has_sc_conv:
        sc = jnp.dot(x_sc, ws_ref[...], preferred_element_type=jnp.float32)
    else:
        sc = x_sc.astype(jnp.float32)          # identity shortcut: direct add

    # ---- residual add + combined bias + relu -------------------------------------
    o_ref[...] = jnp.maximum(acc2 + sc + b2s_ref[...], 0.0).astype(o_ref.dtype)


# ------------------------------------------------------------------- VMEM budgeting
def _vmem_bytes(TL, stride, Cin_p, Cout_p, has_sc_conv):
    """Approximate per-step VMEM working set (bytes)."""
    ML = stride * TL
    x_io = 2 * (ML + 8) * Cin_p * 2                    # double-buffered main+halo blocks
    out_io = 2 * TL * Cout_p * 2                       # double-buffered output blocks
    wgt = (3 * Cin_p + 3 * Cout_p + (Cin_p if has_sc_conv else 0)) * Cout_p * 2
    wgt += 2 * Cout_p * 4                              # f32 biases (single-buffered)
    stitch = (ML + 8) * Cin_p * 2                      # xwin scratch
    live = ((TL + 8) * 3 * Cin_p * 2                   # conv1 im2col slab (bf16)
            + (TL + 8) * Cout_p * 4                    # h1 (f32)
            + TL * 3 * Cout_p * 2                      # conv2 im2col slab (bf16)
            + 2 * TL * Cout_p * 4)                     # conv2 acc + shortcut (f32)
    return x_io + out_io + wgt + stitch + live


def _pick_TL(Lout, stride, Cin_p, Cout_p, has_sc_conv):
    cap = int(0.60 * _VMEM_PHYS)
    tl = min(32, _round_up(Lout, 8))
    for cand in (512, 256, 128, 64, 32):
        tl = min(cand, _round_up(Lout, 8))
        if _vmem_bytes(tl, stride, Cin_p, Cout_p, has_sc_conv) <= cap:
            break
    return tl


def _fold_bn(gamma, beta, mean, var):
    scale = gamma / jnp.sqrt(var + EPS)
    shift = beta - mean * scale
    return scale.astype(jnp.float32), shift.astype(jnp.float32)


# --------------------------------------------------------------------------- wrapper
@functools.partial(jax.jit, static_argnames=("stride",))
def residual_block_pallas(x_ncl, params, stride=1):
    """x_ncl: (N, Cin, L) in PyTorch NCL layout; returns (N, Cout, Lout) float32."""
    N, Cin, L = x_ncl.shape
    Cout = params["w1"].shape[0]
    Lout = (L - 1) // stride + 1
    has_sc_conv = params["ws"] is not None
    if not has_sc_conv and (stride != 1 or Cin != Cout):
        raise ValueError("identity shortcut requires stride == 1 and Cin == Cout")
    if stride > 5:
        raise ValueError("stride > 5 not supported (8-row halo block)")

    Cin_p = _round_up(Cin, LANE)               # lane-dense matmuls / stores
    Cout_p = _round_up(Cout, LANE)
    TL = _pick_TL(Lout, stride, Cin_p, Cout_p, has_sc_conv)
    nLt = -(-Lout // TL)
    ML = stride * TL                           # main input rows per tile

    # ---- input: ONE channels-last bf16 padded slab in HBM (no halo-stack copy) ----
    front = stride + 1                         # conv pad (1) + 1-row h1 halo margin
    P = nLt * ML + 8                           # covers last tile's window + 8-row halo
    xc = jnp.transpose(x_ncl, (0, 2, 1)).astype(jnp.bfloat16)            # (N, L, Cin)
    xc = jnp.pad(xc, ((0, 0), (front, P - front - L), (0, Cin_p - Cin)))  # (N, P, Cin_p)

    # ---- weights: tap-stacked channels-last, BN scales folded in, bf16, padded ----
    s1, b1 = _fold_bn(*params["bn1"])
    s2, b2 = _fold_bn(*params["bn2"])
    w1 = jnp.transpose(params["w1"], (2, 1, 0)) * s1[None, None, :]      # (3, Cin, Cout)
    w2 = jnp.transpose(params["w2"], (2, 1, 0)) * s2[None, None, :]      # (3, Cout, Cout)
    w1 = jnp.pad(w1, ((0, 0), (0, Cin_p - Cin), (0, Cout_p - Cout)))
    w2 = jnp.pad(w2, ((0, 0), (0, Cout_p - Cout), (0, Cout_p - Cout)))
    w1 = w1.reshape(3 * Cin_p, Cout_p).astype(jnp.bfloat16)              # tap-major K
    w2 = w2.reshape(3 * Cout_p, Cout_p).astype(jnp.bfloat16)
    if has_sc_conv:
        ss, bs = _fold_bn(*params["bns"])
        ws = params["ws"][:, :, 0].T * ss[None, :]                       # (Cin, Cout)
        ws = jnp.pad(ws, ((0, Cin_p - Cin), (0, Cout_p - Cout))).astype(jnp.bfloat16)
        b2s = b2 + bs
    else:
        b2s = b2
    b1 = jnp.pad(b1, (0, Cout_p - Cout)).reshape(1, Cout_p)
    b2s = jnp.pad(b2s, (0, Cout_p - Cout)).reshape(1, Cout_p)

    const = dict(pipeline_mode=pl.Buffered(buffer_count=1))  # grid-invariant operands
    in_specs = [
        # overlapping conv window = main block + 8-row halo block of the SAME array
        pl.BlockSpec((None, ML, Cin_p), lambda n, j: (n, j, 0)),
        pl.BlockSpec((None, 8, Cin_p), lambda n, j: (n, (j + 1) * (ML // 8), 0)),
        pl.BlockSpec((3 * Cin_p, Cout_p), lambda n, j: (0, 0), **const),
        pl.BlockSpec((3 * Cout_p, Cout_p), lambda n, j: (0, 0), **const),
    ]
    args = [xc, xc, w1, w2]
    if has_sc_conv:
        in_specs.append(pl.BlockSpec((Cin_p, Cout_p), lambda n, j: (0, 0), **const))
        args.append(ws)
    in_specs += [pl.BlockSpec((1, Cout_p), lambda n, j: (0, 0), **const),
                 pl.BlockSpec((1, Cout_p), lambda n, j: (0, 0), **const)]
    args += [b1, b2s]

    budget = _vmem_bytes(TL, stride, Cin_p, Cout_p, has_sc_conv)
    vmem_limit = max(32 << 20,
                     min(int(1.5 * budget) + (4 << 20),
                         int(0.9 * _VMEM_PHYS), 100 << 20))

    kernel = functools.partial(_resblock_kernel, stride=stride, TL=TL,
                               Lout=Lout, has_sc_conv=has_sc_conv)
    out = pl.pallas_call(
        kernel,
        out_shape=jax.ShapeDtypeStruct((N, nLt * TL, Cout_p), jnp.bfloat16),
        grid_spec=pltpu.PrefetchScalarGridSpec(
            num_scalar_prefetch=0,
            grid=(N, nLt),
            in_specs=in_specs,
            out_specs=pl.BlockSpec((None, TL, Cout_p), lambda n, j: (n, j, 0)),
            scratch_shapes=[pltpu.VMEM((ML + 8, Cin_p), jnp.bfloat16)]),
        compiler_params=pltpu.CompilerParams(
            dimension_semantics=("parallel", "parallel"),
            vmem_limit_bytes=vmem_limit),
    )(*args)

    out = out[:, :Lout, :Cout].astype(jnp.float32)
    return jnp.transpose(out, (0, 2, 1))                                 # (N, Cout, Lout)


# ------------------------- pure-JAX reference (NCL, float32) -------------------------
def _conv1d(x, w, stride, pad):
    return jax.lax.conv_general_dilated(
        x, w, window_strides=(stride,), padding=[(pad, pad)],
        dimension_numbers=("NCH", "OIH", "NCH"))


def _bn(x, gamma, beta, mean, var):
    return ((x - mean[None, :, None]) / jnp.sqrt(var[None, :, None] + EPS)
            * gamma[None, :, None] + beta[None, :, None])


def residual_block_ref(x, params, stride=1):
    out = jax.nn.relu(_bn(_conv1d(x, params["w1"], stride, 1), *params["bn1"]))
    out = _bn(_conv1d(out, params["w2"], 1, 1), *params["bn2"])
    if params["ws"] is not None:
        sc = _bn(_conv1d(x, params["ws"], stride, 0), *params["bns"])
    else:
        sc = x
    return jax.nn.relu(out + sc)


def make_params(key, in_channels, out_channels, use_shortcut_conv):
    ks = jax.random.split(key, 6)

    def bn_params(k):
        k1, k2, k3, k4 = jax.random.split(k, 4)
        gamma = 1.0 + 0.1 * jax.random.normal(k1, (out_channels,), jnp.float32)
        beta = 0.1 * jax.random.normal(k2, (out_channels,), jnp.float32)
        mean = 0.1 * jax.random.normal(k3, (out_channels,), jnp.float32)
        var = jnp.abs(1.0 + 0.1 * jax.random.normal(k4, (out_channels,), jnp.float32))
        return (gamma, beta, mean, var)

    return {
        "w1": 0.2 * jax.random.normal(ks[0], (out_channels, in_channels, 3), jnp.float32),
        "w2": 0.2 * jax.random.normal(ks[1], (out_channels, out_channels, 3), jnp.float32),
        "bn1": bn_params(ks[2]),
        "bn2": bn_params(ks[3]),
        "ws": (0.2 * jax.random.normal(ks[4], (out_channels, in_channels, 1), jnp.float32)
               if use_shortcut_conv else None),
        "bns": bn_params(ks[5]) if use_shortcut_conv else None,
    }


if __name__ == "__main__":
    key = jax.random.PRNGKey(0)
    cases = [
        dict(N=2, Cin=4, Cout=8, L=16, stride=1),    # conv shortcut (Cin != Cout)
        dict(N=2, Cin=8, Cout=8, L=16, stride=1),    # identity shortcut (direct add)
        dict(N=2, Cin=4, Cout=8, L=16, stride=2),    # strided conv + conv shortcut
        dict(N=1, Cin=8, Cout=8, L=700, stride=1),   # multi-tile (halo/mask), identity
        dict(N=1, Cin=4, Cout=8, L=1100, stride=2),  # multi-tile, strided, conv shortcut
    ]
    for i, c in enumerate(cases):
        kx, kp, key = jax.random.split(key, 3)
        use_sc = (c["stride"] != 1) or (c["Cin"] != c["Cout"])
        x = jax.random.normal(kx, (c["N"], c["Cin"], c["L"]), jnp.float32)
        params = make_params(kp, c["Cin"], c["Cout"], use_shortcut_conv=use_sc)

        out = jax.block_until_ready(
            residual_block_pallas(x, params, stride=c["stride"]))
        ref = residual_block_ref(x, params, stride=c["stride"])

        Lout = (c["L"] - 1) // c["stride"] + 1
        assert out.shape == ref.shape == (c["N"], c["Cout"], Lout), (out.shape, ref.shape)
        err = jnp.max(jnp.abs(out - ref))
        # bf16 weights/activations: ~1% expected deviation vs the f32 reference
        assert jnp.allclose(out, ref, atol=5e-2, rtol=5e-2), \
            f"case {i}: max abs err {err}"
    print("KERNEL_OK")
</pallas_src>

<mosaic_0001>
module attributes {stable_mosaic.version = 11 : i64} {
  func.func @_resblock_kernel(%arg0: i32, %arg1: i32, %arg2: memref<1x16x128xbf16, #tpu.memory_space<vmem>>, %arg3: memref<1x8x128xbf16, #tpu.memory_space<vmem>>, %arg4: memref<384x128xbf16, #tpu.memory_space<vmem>>, %arg5: memref<384x128xbf16, #tpu.memory_space<vmem>>, %arg6: memref<128x128xbf16, #tpu.memory_space<vmem>>, %arg7: memref<1x128xf32, #tpu.memory_space<vmem>>, %arg8: memref<1x128xf32, #tpu.memory_space<vmem>>, %arg9: memref<1x16x128xbf16, #tpu.memory_space<vmem>>, %arg10: memref<24x128xbf16, #tpu.memory_space<vmem>>) attributes {dimension_semantics = [#tpu.dimension_semantics<parallel>, #tpu.dimension_semantics<parallel>], iteration_bounds = array<i64: 2, 1>, scalar_prefetch = 0 : i64, scratch_operands = 1 : i64, tpu.core_type = #tpu.core_type<tc>, window_params = [{transform_indices = @transform_0, window_bounds = array<i64: 1, 16, 128>}, {transform_indices = @transform_1, window_bounds = array<i64: 1, 8, 128>}, {pipeline_mode = #tpu.pipeline_mode<synchronous>, transform_indices = @transform_2, window_bounds = array<i64: 384, 128>}, {pipeline_mode = #tpu.pipeline_mode<synchronous>, transform_indices = @transform_3, window_bounds = array<i64: 384, 128>}, {pipeline_mode = #tpu.pipeline_mode<synchronous>, transform_indices = @transform_4, window_bounds = array<i64: 128, 128>}, {pipeline_mode = #tpu.pipeline_mode<synchronous>, transform_indices = @transform_5, window_bounds = array<i64: 1, 128>}, {pipeline_mode = #tpu.pipeline_mode<synchronous>, transform_indices = @transform_6, window_bounds = array<i64: 1, 128>}, {transform_indices = @transform_7, window_bounds = array<i64: 1, 16, 128>}]} {
    %c0 = arith.constant 0 : index
    %c0_0 = arith.constant 0 : index
    %c0_1 = arith.constant 0 : index
    %0 = vector.load %arg2[%c0, %c0_0, %c0_1] : memref<1x16x128xbf16, #tpu.memory_space<vmem>>, vector<1x16x128xbf16>
    %1 = vector.shape_cast %0 : vector<1x16x128xbf16> to vector<16x128xbf16>
    %c0_2 = arith.constant 0 : index
    %c0_3 = arith.constant 0 : index
    %2 = vector.load %arg10[%c0_2, %c0_3] : memref<24x128xbf16, #tpu.memory_space<vmem>>, vector<16x128xbf16>
    tpu.vector_store %arg10[%c0_2, %c0_3], %1 {strides = array<i32>} : memref<24x128xbf16, #tpu.memory_space<vmem>>, vector<16x128xbf16>,
    %c0_4 = arith.constant 0 : index
    %c0_5 = arith.constant 0 : index
    %c0_6 = arith.constant 0 : index
    %3 = vector.load %arg3[%c0_4, %c0_5, %c0_6] : memref<1x8x128xbf16, #tpu.memory_space<vmem>>, vector<1x8x128xbf16>
    %4 = vector.shape_cast %3 : vector<1x8x128xbf16> to vector<8x128xbf16>
    %c16 = arith.constant 16 : index
    %c0_7 = arith.constant 0 : index
    %5 = vector.load %arg10[%c16, %c0_7] : memref<24x128xbf16, #tpu.memory_space<vmem>>, vector<8x128xbf16>
    tpu.vector_store %arg10[%c16, %c0_7], %4 {strides = array<i32>} : memref<24x128xbf16, #tpu.memory_space<vmem>>, vector<8x128xbf16>,
    %c0_8 = arith.constant 0 : index
    %c0_9 = arith.constant 0 : index
    %6 = vector.load %arg10[%c0_8, %c0_9] : memref<24x128xbf16, #tpu.memory_space<vmem>>, vector<18x128xbf16>
    %c1 = arith.constant 1 : index
    %c0_10 = arith.constant 0 : index
    %7 = vector.load %arg10[%c1, %c0_10] : memref<24x128xbf16, #tpu.memory_space<vmem>>, vector<18x128xbf16>
    %c2 = arith.constant 2 : index
    %c0_11 = arith.constant 0 : index
    %8 = vector.load %arg10[%c2, %c0_11] : memref<24x128xbf16, #tpu.memory_space<vmem>>, vector<18x128xbf16>
    %9 = tpu.concatenate %6, %7, %8 in 1 : vector<18x128xbf16>, vector<18x128xbf16>, vector<18x128xbf16> -> vector<18x384xbf16>
    %c0_12 = arith.constant 0 : index
    %c0_13 = arith.constant 0 : index
    %10 = vector.load %arg4[%c0_12, %c0_13] : memref<384x128xbf16, #tpu.memory_space<vmem>>, vector<384x128xbf16>
    %cst = arith.constant dense<0.000000e+00> : vector<18x128xf32>
    %11 = tpu.matmul %9, %10, %cst {dimension_numbers = #tpu.dot_dimension_numbers<[1], [0], [0], [1], [0, 0, 1, 1], [], []>} : vector<18x384xbf16>, vector<384x128xbf16>, vector<18x128xf32> -> vector<18x128xf32>
    %c0_14 = arith.constant 0 : index
    %c0_15 = arith.constant 0 : index
    %12 = vector.load %arg7[%c0_14, %c0_15] : memref<1x128xf32, #tpu.memory_space<vmem>>, vector<1x128xf32>
    %13 = vector.broadcast %12 : vector<1x128xf32> to vector<18x128xf32>
    %14 = arith.addf %11, %13 : vector<18x128xf32>
    %cst_16 = arith.constant 0.000000e+00 : f32
    %15 = vector.broadcast %cst_16 : f32 to vector<18x128xf32>
    %16 = arith.maximumf %14, %15 : vector<18x128xf32>
    %c16_i32 = arith.constant 16 : i32
    %17 = arith.muli %arg1, %c16_i32 : i32
    %c1_i32 = arith.constant 1 : i32
    %18 = arith.subi %17, %c1_i32 : i32
    %19 = tpu.iota {dimensions = array<i32: 0>} : vector<18x1xi32>
    %20 = vector.broadcast %18 : i32 to vector<18x1xi32>
    %21 = arith.addi %20, %19 : vector<18x1xi32>
    %c0_i32 = arith.constant 0 : i32
    %22 = vector.broadcast %c0_i32 : i32 to vector<18x1xi32>
    %23 = arith.cmpi sge, %21, %22 : vector<18x1xi32>
    %c16_i32_17 = arith.constant 16 : i32
    %24 = vector.broadcast %c16_i32_17 : i32 to vector<18x1xi32>
    %25 = arith.cmpi slt, %21, %24 : vector<18x1xi32>
    %26 = arith.andi %23, %25 : vector<18x1xi1>
    %cst_18 = arith.constant 0.000000e+00 : f32
    %27 = vector.shape_cast %26 : vector<18x1xi1> to vector<18x1xi1>
    %28 = vector.broadcast %27 : vector<18x1xi1> to vector<18x128xi1>
    %29 = vector.broadcast %cst_18 : f32 to vector<18x128xf32>
    %30 = arith.select %28, %16, %29 : vector<18x128xi1>, vector<18x128xf32>
    %31 = arith.truncf %30 : vector<18x128xf32> to vector<18x128xbf16>
    %32 = vector.extract_strided_slice %31 {offsets = [0, 0], sizes = [16, 128], strides = [1, 1]} : vector<18x128xbf16> to vector<16x128xbf16>
    %33 = vector.extract_strided_slice %31 {offsets = [1, 0], sizes = [16, 128], strides = [1, 1]} : vector<18x128xbf16> to vector<16x128xbf16>
    %34 = vector.extract_strided_slice %31 {offsets = [2, 0], sizes = [16, 128], strides = [1, 1]} : vector<18x128xbf16> to vector<16x128xbf16>
    %35 = tpu.concatenate %32, %33, %34 in 1 : vector<16x128xbf16>, vector<16x128xbf16>, vector<16x128xbf16> -> vector<16x384xbf16>
    %c0_19 = arith.constant 0 : index
    %c0_20 = arith.constant 0 : index
    %36 = vector.load %arg5[%c0_19, %c0_20] : memref<384x128xbf16, #tpu.memory_space<vmem>>, vector<384x128xbf16>
    %cst_21 = arith.constant dense<0.000000e+00> : vector<16x128xf32>
    %37 = tpu.matmul %35, %36, %cst_21 {dimension_numbers = #tpu.dot_dimension_numbers<[1], [0], [0], [1], [0, 0, 1, 1], [], []>} : vector<16x384xbf16>, vector<384x128xbf16>, vector<16x128xf32> -> vector<16x128xf32>
    %c2_22 = arith.constant 2 : index
    %c0_23 = arith.constant 0 : index
    %38 = vector.load %arg10[%c2_22, %c0_23] : memref<24x128xbf16, #tpu.memory_space<vmem>>, vector<16x128xbf16>
    %c0_24 = arith.constant 0 : index
    %c0_25 = arith.constant 0 : index
    %39 = vector.load %arg6[%c0_24, %c0_25] : memref<128x128xbf16, #tpu.memory_space<vmem>>, vector<128x128xbf16>
    %cst_26 = arith.constant dense<0.000000e+00> : vector<16x128xf32>
    %40 = tpu.matmul %38, %39, %cst_26 {dimension_numbers = #tpu.dot_dimension_numbers<[1], [0], [0], [1], [0, 0, 1, 1], [], []>} : vector<16x128xbf16>, vector<128x128xbf16>, vector<16x128xf32> -> vector<16x128xf32>
    %41 = arith.addf %37, %40 : vector<16x128xf32>
    %c0_27 = arith.constant 0 : index
    %c0_28 = arith.constant 0 : index
    %42 = vector.load %arg8[%c0_27, %c0_28] : memref<1x128xf32, #tpu.memory_space<vmem>>, vector<1x128xf32>
    %43 = vector.broadcast %42 : vector<1x128xf32> to vector<16x128xf32>
    %44 = arith.addf %41, %43 : vector<16x128xf32>
    %cst_29 = arith.constant 0.000000e+00 : f32
    %45 = vector.broadcast %cst_29 : f32 to vector<16x128xf32>
    %46 = arith.maximumf %44, %45 : vector<16x128xf32>
    %47 = arith.truncf %46 : vector<16x128xf32> to vector<16x128xbf16>
    %c0_30 = arith.constant 0 : index
    %c0_31 = arith.constant 0 : index
    %c0_32 = arith.constant 0 : index
    %48 = vector.load %arg9[%c0_30, %c0_31, %c0_32] : memref<1x16x128xbf16, #tpu.memory_space<vmem>>, vector<1x16x128xbf16>
    %49 = vector.shape_cast %48 : vector<1x16x128xbf16> to vector<16x128xbf16>
    %50 = vector.shape_cast %47 : vector<16x128xbf16> to vector<1x16x128xbf16>
    tpu.vector_store %arg9[%c0_30, %c0_31, %c0_32], %50 {strides = array<i32>} : memref<1x16x128xbf16, #tpu.memory_space<vmem>>, vector<1x16x128xbf16>,
    return
  }
  func.func @transform_0(%arg0: i32, %arg1: i32) -> (i32, i32, i32) {
    %c0_i32 = arith.constant 0 : i32
    %c0_i32_0 = arith.constant 0 : i32
    return %arg0, %arg1, %c0_i32 : i32, i32, i32
  }
  func.func @transform_1(%arg0: i32, %arg1: i32) -> (i32, i32, i32) {
    %c1_i32 = arith.constant 1 : i32
    %0 = arith.addi %arg1, %c1_i32 : i32
    %c2_i32 = arith.constant 2 : i32
    %1 = arith.muli %0, %c2_i32 : i32
    %c0_i32 = arith.constant 0 : i32
    %c0_i32_0 = arith.constant 0 : i32
    return %arg0, %1, %c0_i32 : i32, i32, i32
  }
  func.func @transform_2(%arg0: i32, %arg1: i32) -> (i32, i32) {
    %c0_i32 = arith.constant 0 : i32
    %c0_i32_0 = arith.constant 0 : i32
    %c0_i32_1 = arith.constant 0 : i32
    return %c0_i32, %c0_i32_0 : i32, i32
  }
  func.func @transform_3(%arg0: i32, %arg1: i32) -> (i32, i32) {
    %c0_i32 = arith.constant 0 : i32
    %c0_i32_0 = arith.constant 0 : i32
    %c0_i32_1 = arith.constant 0 : i32
    return %c0_i32, %c0_i32_0 : i32, i32
  }
  func.func @transform_4(%arg0: i32, %arg1: i32) -> (i32, i32) {
    %c0_i32 = arith.constant 0 : i32
    %c0_i32_0 = arith.constant 0 : i32
    %c0_i32_1 = arith.constant 0 : i32
    return %c0_i32, %c0_i32_0 : i32, i32
  }
  func.func @transform_5(%arg0: i32, %arg1: i32) -> (i32, i32) {
    %c0_i32 = arith.constant 0 : i32
    %c0_i32_0 = arith.constant 0 : i32
    %c0_i32_1 = arith.constant 0 : i32
    return %c0_i32, %c0_i32_0 : i32, i32
  }
  func.func @transform_6(%arg0: i32, %arg1: i32) -> (i32, i32) {
    %c0_i32 = arith.constant 0 : i32
    %c0_i32_0 = arith.constant 0 : i32
    %c0_i32_1 = arith.constant 0 : i32
    return %c0_i32, %c0_i32_0 : i32, i32
  }
  func.func @transform_7(%arg0: i32, %arg1: i32) -> (i32, i32, i32) {
    %c0_i32 = arith.constant 0 : i32
    %c0_i32_0 = arith.constant 0 : i32
    return %arg0, %arg1, %c0_i32 : i32, i32, i32
  }
}

</mosaic_0001>

<bundles_post_ra>
// kernel: residual_block_pallas.1
= control target key start
LH: loop header
LB: loop body
LE: loop exit
PB: predicated region body
PF: predicated region fallthrough
CT: control target
= control target key end

     0   :  { %s1575_s24 = smov 0   ;;  %s1577_s25 = smov 0   ;;  %s1794_s0 = inlined_call_operand.vmem [shape: bf16[2,24,128], index: 0, kind: input, shape index: {}, may-alias: {0,1}]   ;;  %s1795_s1 = inlined_call_operand.vmem [shape: bf16[2,24,128], index: 1, kind: input, shape index: {}, may-alias: {0,1}]   ;;  %s1796_s2 = inlined_call_operand.vmem [shape: bf16[384,128], index: 2, kind: input, shape index: {}]   ;;  %s1797_s3 = inlined_call_operand.vmem [shape: bf16[384,128], index: 3, kind: input, shape index: {}]   ;;  %s1798_s4 = inlined_call_operand.vmem [shape: bf16[128,128], index: 4, kind: input, shape index: {}]   ;;  %s1799_s5 = inlined_call_operand.vmem [shape: f32[1,128], index: 5, kind: input, shape index: {}]   ;;  %s1800_s6 = inlined_call_operand.vmem [shape: f32[1,128], index: 6, kind: input, shape index: {}]   ;;  %s1801_s7 = inlined_call_operand.vmem [shape: bf16[2,16,128], index: 7, kind: output, shape index: {}]  }
   0x1   :  { %s1579_s26 = smov 0  }
   0x2 LB: > { %s29_s27 = sadd.s32 1, %s1529_s25  ;;  %p1180_p0 = scmp.ge.s32.totalorder %s1533_s26, 1  ;;  %s1533_s26 = sphi %s1579_s26, %s17_s26   ;;  %s1529_s25 = sphi %s1577_s25, %s1803_s25   ;;  %s1525_s24 = sphi %s1575_s24, %s1802_s24  }
   0x3   : > { %p31_p1 = scmp.ge.s32.totalorder %s29_s27, 2  ;;  %p289_p2 = scmp.lt.s32.totalorder %s1533_s26, 3 }
   0x5   : > { %s1805_s27 = smov (%p31_p1, %s29_s27), 0  ;;  %p290_p3 = pnand %p1180_p0, %p289_p2 }
   0x6   : > { %p348_p4 = scmp.lt.s32.totalorder (!%p290_p3), %s1525_s24, 1 }
   0x7   : > { %293 = sbr.rel (%p290_p3) target bundleno = 357 (0x165), region = 48 }
   0xc   : > { %v1421_v0 = vld [vmem:[%s1796_s2 + $0x38] sm:$0xff]  ;;  %v1420_v3 = vld [vmem:[%s1796_s2 + $0x30] sm:$0xff]  ;;  %s1807_s24 = smov (!%p348_p4, %s1525_s24), 1  ;;  %v1419_v6 = vld [vmem:[%s1796_s2 + $0x28] sm:$0xff]  ;;  %vm407_vm0 = vsmask.f32 7424 }
   0xd   : > { %v1429_v1 = vld [vmem:[%s1796_s2 + $0x78] sm:$0xff]  ;;  %630 = vmatpush.bf16.msra.mxu0 %v1421_v0  ;;  %v1428_v4 = vld [vmem:[%s1796_s2 + $0x70] sm:$0xff]  ;;  %s1482_s17 = smul.u32 12, %s1807_s24  ;;  %v1427_v7 = vld [vmem:[%s1796_s2 + $0x68] sm:$0xff]  ;;  %vm428_vm1 = vcmask 1046528   ;;  %s1413_s15 = sshll.u32 %s1807_s24, 3 }
   0xe   : > { %v1437_v2 = vld [vmem:[%s1796_s2 + $0xb8] sm:$0xff]  ;;  %648 = vmatpush.bf16.msra.mxu1 %v1429_v1  ;;  %v1436_v5 = vld [vmem:[%s1796_s2 + $0xb0] sm:$0xff]  ;;  %v1435_v8 = vld [vmem:[%s1796_s2 + $0xa8] sm:$0xff]  ;;  %s381_s18 = scalar_lea.vmem %s1801_s7, %s1413_s15 }
   0xf   : > { %666 = vmatpush.bf16.msra.mxu2 %v1437_v2  ;;  %s355_s28 = scalar_lea.vmem %s1794_s0, %s1482_s17  ;;  %s1412_s29 = sadd.s32 8, %s1482_s17  ;;  %v1418_v11 = vld [vmem:[%s1796_s2 + $0x20] sm:$0xff]  ;;  %v1417_v14 = vld [vmem:[%s1796_s2 + $0x18] sm:$0xff]  ;;  %v1416_v19 = vld [vmem:[%s1796_s2 + $0x10] sm:$0xff] }
  0x10   : > { %s370_s11 = scalar_lea.vmem %s1795_s1, %s1412_s29  ;;  %v383_v9 = vld [vmem:[%s355_s28] sm:$0xff]   ;;  %v1425_v15 = vld [vmem:[%s1796_s2 + $0x58] sm:$0xff]  ;;  %v1424_v20 = vld [vmem:[%s1796_s2 + $0x50] sm:$0xff] }
  0x11   : > { %631 = vmatpush.bf16.msra.mxu0 %v1420_v3  ;;  %v387_v10 = vld [vmem:[%s370_s11] sm:$0xf]  ;;  %385 = vst [vmem:[#allocation2] sm:$0xff] %v383_v9   ;;  %v1433_v16 = vld [vmem:[%s1796_s2 + $0x98] sm:$0xff]  ;;  %v1432_v24 = vld [vmem:[%s1796_s2 + $0x90] sm:$0xff] }
  0x12   : > { %649 = vmatpush.bf16.msra.mxu1 %v1428_v4  ;;  %v1426_v12 = vld [vmem:[%s1796_s2 + $0x60] sm:$0xff]  ;;  %388 = vst [vmem:[#allocation2 + $0x8] sm:$0xf] %v387_v10  ;;  %v1469_v23 = vld [vmem:[%s1798_s4 + $0x38] sm:$0xff]  ;;  %v1468_v28 = vld [vmem:[%s1798_s4 + $0x30] sm:$0xff] }
  0x13   : > { %667 = vmatpush.bf16.msra.mxu2 %v1436_v5  ;;  %v1434_v13 = vld [vmem:[%s1796_s2 + $0xa0] sm:$0xff]  ;;  %859 = vmatpush.bf16.msra.mxu3 %v1469_v23  ;;  %v1415_v29 = vld [vmem:[%s1796_s2 + $0x8] sm:$0xff]  ;;  %v1445_v44 = vld [vmem:[%s1797_s3 + $0x38] sm:$0xff] }
  0x14   : > { %v1423_v30 = vld [vmem:[%s1796_s2 + $0x48] sm:$0xff]  ;;  %v1414_v37 = vld [vmem:[%s1796_s2] sm:$0xff]  ;;  %v1444_v47 = vld [vmem:[%s1797_s3 + $0x30] sm:$0xff] }
  0x15   : > { %632 = vmatpush.bf16.msra.mxu0 %v1419_v6  ;;  %v1431_v34 = vld [vmem:[%s1796_s2 + $0x88] sm:$0xff]  ;;  %v1422_v38 = vld [vmem:[%s1796_s2 + $0x40] sm:$0xff]  ;;  %v1465_v55 = vld [vmem:[%s1798_s4 + $0x18] sm:$0xff] }
  0x16   : > { %650 = vmatpush.bf16.msra.mxu1 %v1427_v7  ;;  %v1467_v36 = vld [vmem:[%s1798_s4 + $0x28] sm:$0xff]  ;;  %v1430_v41 = vld [vmem:[%s1796_s2 + $0x80] sm:$0xff]  ;;  %v1461_v56 = vld [vmem:[%s1797_s3 + $0xb8] sm:$0xff] }
  0x17   : > { %668 = vmatpush.bf16.msra.mxu2 %v1435_v8  ;;  %860 = vmatpush.bf16.msra.mxu3 %v1468_v28  ;;  %v1466_v53 = vld [vmem:[%s1798_s4 + $0x20] sm:$0xff]  ;;  %v1443_v54 = vld [vmem:[%s1797_s3 + $0x28] sm:$0xff]  ;;  %v1464_v58 = vld [vmem:[%s1798_s4 + $0x10] sm:$0xff] }
  0x18   : > { %v1471_v17 = vld [vmem:[#allocation2] sm:$0xff]   ;;  %v1453_v59 = vld [vmem:[%s1797_s3 + $0x78] sm:$0xff]  ;;  %v1460_v60 = vld [vmem:[%s1797_s3 + $0xb0] sm:$0xff] }
  0x19   : > { %633 = vmatpush.bf16.msra.mxu0 %v1418_v11  ;;  %v392_v18 = vld [vmem:[#allocation2 + $0x8] sm:$0x3]  ;;  %v411_v21 = vshll.u32 %v1471_v17, 16  ;;  %v1479_v26 = vld [vmem:[#allocation2] sm:$0xf0]  ;;  %v409_v31 = vshrl.u32 %v1471_v17, 16 }
  0x1a   : > { %651 = vmatpush.bf16.msra.mxu1 %v1426_v12  ;;  %v405_v22 = vunpack.c.l.b16 %v392_v18  ;;  %v1480_v27 = vld [vmem:[#allocation2] sm:$0xe]  ;;  %v391_v48 = vld [vmem:[#allocation2 + $0x8] sm:$0x1]  ;;  %v1441_v61 = vld [vmem:[%s1797_s3 + $0x18] sm:$0xff] }
  0x1b   : > { %669 = vmatpush.bf16.msra.mxu2 %v1434_v13  ;;  %v413_v32 = vrot.slane %v411_v21, 1  ;;  %v1481_v35 = vor.u32 %v1480_v27, %v1479_v26  ;;  %861 = vmatpush.bf16.msra.mxu3 %v1467_v36  ;;  %v399_v49 = vunpack.c.l.b16 %v391_v48  ;;  %v1442_v57 = vld [vmem:[%s1797_s3 + $0x20] sm:$0xff]  ;;  %v1463_v62 = vld [vmem:[%s1798_s4 + $0x8] sm:$0xff]  ;;  %v1452_v63 = vld [vmem:[%s1797_s3 + $0x70] sm:$0xff] }
  0x1c   : > { %v406_v25 = vpack.c.b16 %v405_v22, %v405_v22  ;;  %v1459_v0 = vld [vmem:[%s1797_s3 + $0xa8] sm:$0xff]  ;;  %v1440_v1 = vld [vmem:[%s1797_s3 + $0x10] sm:$0xff]  ;;  %v1462_v3 = vld [vmem:[%s1798_s4] sm:$0xff] }
  0x1d   : > { %634 = vmatpush.bf16.msra.mxu0 %v1417_v14  ;;  %v414_v39 = vor.u32 %v413_v32, %v409_v31  ;;  %v429_v42 = vrot.slane %v1481_v35, 1  ;;  %v401_v51 = vpack.c.b16 %v399_v49, %v399_v49  ;;  %v1451_v4 = vld [vmem:[%s1797_s3 + $0x68] sm:$0xff]  ;;  %v1458_v5 = vld [vmem:[%s1797_s3 + $0xa0] sm:$0xff]  ;;  %v1457_v9 = vld [vmem:[%s1797_s3 + $0x98] sm:$0xff] }
  0x1e   : > { %652 = vmatpush.bf16.msra.mxu1 %v1425_v15  ;;  %v416_v33 = vshll.u32 %v406_v25, 16  ;;  %v430_v43 = vrot.slane %v406_v25, 1  ;;  %v420_v50 = vshrl.u32 %v406_v25, 16  ;;  %v1439_v6 = vld [vmem:[%s1797_s3 + $0x8] sm:$0xff]  ;;  %v1450_v8 = vld [vmem:[%s1797_s3 + $0x60] sm:$0xff]  ;;  %v1449_v11 = vld [vmem:[%s1797_s3 + $0x58] sm:$0xff] }
  0x1f   : > { %670 = vmatpush.bf16.msra.mxu2 %v1433_v16  ;;  %862 = vmatpush.bf16.msra.mxu3 %v1466_v53  ;;  %v808_v2 = vrot.slane %v401_v51, 1  ;;  %v1438_v10 = vld [vmem:[%s1797_s3] sm:$0xff]  ;;  %v1456_v12 = vld [vmem:[%s1797_s3 + $0x90] sm:$0xff]  ;;  %v1455_v15 = vld [vmem:[%s1797_s3 + $0x88] sm:$0xff] }
  0x20   : > { %v418_v40 = vrot.slane %v416_v33, 1  ;;  %v431_v46 = vsel %vm428_vm1, %v429_v42, %v430_v43  ;;  %v1448_v13 = vld [vmem:[%s1797_s3 + $0x50] sm:$0xff]  ;;  %v1509_v14 = vld [vmem:[%s1799_s5] ss:$0 sm:$0xff]  ;;  %v1447_v16 = vld [vmem:[%s1797_s3 + $0x48] sm:$0xff] }
  0x21   : > { %635 = vmatpush.bf16.msra.mxu0 %v1416_v19  ;;  %v809_v7 = vsel %vm428_vm1, %v429_v42, %v808_v2  ;;  %v689_v19 = vlaneseq  ;;  %v1454_v21 = vld [vmem:[%s1797_s3 + $0x80] sm:$0xff] }
  0x22   : > { %653 = vmatpush.bf16.msra.mxu1 %v1424_v20  ;;  %v419_v45 = vsel %vm407_vm0, %v414_v39, %v418_v40  ;;  %v422_v52 = vor.u32 %v420_v50, %v418_v40  ;;  %v1446_v22 = vld [vmem:[%s1797_s3 + $0x40] sm:$0xff] }
  0x23   : > { %671 = vmatpush.bf16.msra.mxu2 %v1432_v24  ;;  %863 = vmatpush.bf16.msra.mxu3 %v1465_v55  ;;  %v690_v24 = vshrl.u32 %v689_v19, 7 }
  0x25   : > { %636 = vmatpush.bf16.msra.mxu0 %v1415_v29  ;;  %v694_v27 = vadd.s32 4294967295, %v690_v24  ;;  %v692_v39 = vadd.s32 16, %v690_v24 }
  0x26   : > { %654 = vmatpush.bf16.msra.mxu1 %v1423_v30 }
  0x27   : > { %672 = vmatpush.bf16.msra.mxu2 %v1431_v34  ;;  %864 = vmatpush.bf16.msra.mxu3 %v1464_v58  ;;  %vm697_vm2 = vcmp.ge.s32.totalorder %v694_v27, 0 }
  0x29   : > { %637 = vmatpush.bf16.msra.mxu0 %v1414_v37 }
  0x2a   : > { %655 = vmatpush.bf16.msra.mxu1 %v1422_v38 }
  0x2b   : > { %673 = vmatpush.bf16.msra.mxu2 %v1430_v41  ;;  %865 = vmatpush.bf16.msra.mxu3 %v1463_v62 }
  0x2c   : > { %638 = vmatmul.bf16.vlgmr.msra.gmra.mxu0 %v1471_v17 }
  0x2d   : > { %1017 = vmatpush.bf16.msrb.mxu0 %v1445_v44  ;;  %656 = vmatmul.bf16.vlgmr.msra.gmra.mxu1 %v419_v45  ;;  %v696_v44 = vadd.s32 4294967295, %v692_v39 }
  0x2e   : > { %674 = vmatmul.bf16.vlgmr.msra.gmra.mxu2 %v431_v46  ;;  %1031 = vmatpush.bf16.msrb.mxu1 %v1453_v59 }
  0x2f   : > { %1045 = vmatpush.bf16.msrb.mxu2 %v1461_v56  ;;  %866 = vmatpush.bf16.msra.mxu3 %v1462_v3  ;;  %vm702_vm3 = vcmp.lt.s32.totalorder %v696_v44, 16 }
  0x31   : > { %1018 = vmatpush.bf16.msrb.mxu0 %v1444_v47 }
  0x32   : > { %1032 = vmatpush.bf16.msrb.mxu1 %v1452_v63  ;;  %867 = vmatmul.bf16.vlgmr.msra.gmra.mxu3 %v809_v7 }
  0x33   : > { %1046 = vmatpush.bf16.msrb.mxu2 %v1460_v60 }
  0x35   : > { %1019 = vmatpush.bf16.msrb.mxu0 %v1443_v54 }
  0x36   : > { %1033 = vmatpush.bf16.msrb.mxu1 %v1451_v4 }
  0x37   : > { %1047 = vmatpush.bf16.msrb.mxu2 %v1459_v0 }
  0x39   : > { %1020 = vmatpush.bf16.msrb.mxu0 %v1442_v57 }
  0x3a   : > { %1034 = vmatpush.bf16.msrb.mxu1 %v1450_v8 }
  0x3b   : > { %1048 = vmatpush.bf16.msrb.mxu2 %v1458_v5 }
  0x3c   : > { %643 = vmatmul.bf16.gmra.mxu0 %v401_v51 }
  0x3d   : > { %661 = vmatmul.bf16.gmra.mxu1 %v422_v52  ;;  %1021 = vmatpush.bf16.msrb.mxu0 %v1441_v61 }
  0x3e   : > { %679 = vmatmul.bf16.gmra.mxu2 %v430_v43  ;;  %1035 = vmatpush.bf16.msrb.mxu1 %v1449_v11 }
  0x3f   : > { %1049 = vmatpush.bf16.msrb.mxu2 %v1457_v9 }
  0x41   : > { %1022 = vmatpush.bf16.msrb.mxu0 %v1440_v1 }
  0x42   : > { %1036 = vmatpush.bf16.msrb.mxu1 %v1448_v13 }
  0x43   : > { %1050 = vmatpush.bf16.msrb.mxu2 %v1456_v12 }
  0x45   : > { %1023 = vmatpush.bf16.msrb.mxu0 %v1439_v6 }
  0x46   : > { %1037 = vmatpush.bf16.msrb.mxu1 %v1447_v16 }
  0x47   : > { %1051 = vmatpush.bf16.msrb.mxu2 %v1455_v15  ;;  %v1510_v15 = vld [vmem:[%s1800_s6] ss:$0 sm:$0xff] }
  0x49   : > { %1024 = vmatpush.bf16.msrb.mxu0 %v1438_v10 }
  0x4a   : > { %1038 = vmatpush.bf16.msrb.mxu1 %v1446_v22 }
  0x4b   : > { %1052 = vmatpush.bf16.msrb.mxu2 %v1454_v21 }
  0xa9   : > { %v639_v17 = vpop.f32.mrf.mxu0 }
  0xaa   : > { %v657_v18 = vpop.f32.mrf.mxu1  ;;  %v640_v20 = vadd.f32 %v1509_v14, %v639_v17 }
  0xac   : > { %v658_v23 = vadd.f32 %v657_v18, %v640_v20 }
  0xb1   : > { %v675_v25 = vpop.f32.mrf.mxu2  ;;  %v641_v28 = vpop.f32.mrf.mxu0 }
  0xb2   : > { %v676_v26 = vadd.f32 %v675_v25, %v658_v23  ;;  %v659_v29 = vpop.f32.mrf.mxu1  ;;  %v642_v30 = vadd.f32 %v1509_v14, %v641_v28 }
  0xb4   : > { %v684_v31 = vmax.f32 %v676_v26, 0.0  ;;  %v660_v32 = vadd.f32 %v659_v29, %v642_v30 }
  0xb5   : > { %v868_v4 = vpop.f32.mrf.mxu3 }
  0xb6   : > { %v712_v33 = vsel %vm697_vm2, %v684_v31, 0.0 }
  0xb7   : > { %v715_v40 = vpack.c.bf16 %v712_v33, %v712_v33 }
  0xb9   : > { %v677_v34 = vpop.f32.mrf.mxu2  ;;  %v644_v36 = vpop.f32.mrf.mxu0  ;;  %v720_v45 = vunpack.c.l.b16 %v715_v40 }
  0xba   : > { %v678_v35 = vadd.f32 %v677_v34, %v660_v32  ;;  %v662_v37 = vpop.f32.mrf.mxu1  ;;  %v645_v38 = vadd.f32 %v1509_v14, %v644_v36 }
  0xbc   : > { %v685_v41 = vmax.f32 %v678_v35, 0.0  ;;  %v663_v43 = vadd.f32 %v662_v37, %v645_v38 }
  0xbd   : > { %v870_v9 = vpop.f32.mrf.mxu3 }
  0xbe   : > { %v716_v42 = vpack.c.bf16 %v685_v41, %v685_v41 }
  0xc0   : > { %v721_v46 = vunpack.c.l.b16 %v716_v42 }
  0xc1   : > { %v680_v47 = vpop.f32.mrf.mxu2  ;;  %v646_v50 = vpop.f32.mrf.mxu0 }
  0xc2   : > { %v722_v48 = vpack.c.b16 %v721_v46, %v720_v45  ;;  %v681_v49 = vadd.f32 %v680_v47, %v663_v43  ;;  %v664_v51 = vpop.f32.mrf.mxu1 }
  0xc4   : > { %v686_v52 = vmax.f32 %v681_v49, 0.0  ;;  %1025 = vmatmul.bf16.vlgmr.msrb.gmra.mxu0 %v722_v48  ;;  %v730_v55 = vshll.u32 %v722_v48, 16  ;;  %v740_v61 = vrot.slane %v722_v48, 1  ;;  %v728_v63 = vshrl.u32 %v722_v48, 16 }
  0xc6   : > { %v714_v53 = vsel %vm702_vm3, %v686_v52, 0.0  ;;  %v732_v59 = vrot.slane %v730_v55, 1 }
  0xc7   : > { %v717_v54 = vpack.c.bf16 %v714_v53, %v714_v53 }
  0xc8   : > { %v733_v1 = vor.u32 %v732_v59, %v728_v63 }
  0xc9   : > { %v725_v56 = vunpack.c.l.b16 %v717_v54  ;;  %v682_v57 = vpop.f32.mrf.mxu2 }
  0xcb   : > { %v726_v58 = vpack.c.b16 %v725_v56, %v725_v56 }
  0xcd   : > { %v735_v60 = vshll.u32 %v726_v58, 16  ;;  %v741_v62 = vrot.slane %v726_v58, 1 }
  0xcf   : > { %v742_v0 = vsel %vm428_vm1, %v740_v61, %v741_v62  ;;  %v737_v2 = vrot.slane %v735_v60, 1 }
  0xd0   : > { %1053 = vmatmul.bf16.vlgmr.msrb.gmra.mxu2 %v742_v0 }
  0xd1   : > { %v738_v3 = vsel %vm407_vm0, %v733_v1, %v737_v2 }
  0xd2   : > { %1039 = vmatmul.bf16.vlgmr.msrb.gmra.mxu1 %v738_v3 }
 0x141   : > { %v1026_v5 = vpop.f32.mrf.mxu0 }
 0x142   : > { %v1027_v8 = vadd.f32 %v1026_v5, %v868_v4 }
 0x149   : > { %v1028_v10 = vpop.f32.mrf.mxu0 }
 0x14a   : > { %v1029_v13 = vadd.f32 %v1028_v10, %v870_v9 }
 0x14f   : > { %v1040_v6 = vpop.f32.mrf.mxu1 }
 0x150   : > { %v1041_v11 = vadd.f32 %v1040_v6, %v1027_v8 }
 0x153   : > { %v1054_v7 = vpop.f32.mrf.mxu2 }
 0x154   : > { %v1055_v14 = vadd.f32 %v1054_v7, %v1041_v11 }
 0x156   : > { %v1063_v18 = vadd.f32 %v1510_v15, %v1055_v14 }
 0x157   : > { %v1042_v12 = vpop.f32.mrf.mxu1 }
 0x158   : > { %v1043_v16 = vadd.f32 %v1042_v12, %v1029_v13  ;;  %v1065_v21 = vmax.f32 %v1063_v18, 0.0 }
 0x15b   : > { %v1056_v17 = vpop.f32.mrf.mxu2 }
 0x15c   : > { %v1057_v19 = vadd.f32 %v1056_v17, %v1043_v16 }
 0x15e   : > { %v1064_v20 = vadd.f32 %v1510_v15, %v1057_v19 }
 0x160   : > { %v1066_v22 = vmax.f32 %v1064_v20, 0.0 }
 0x162   : > { %v1477_v23 = vpack.c.bf16 %v1066_v22, %v1065_v21 }
 0x164   : > { %1478 = vst [vmem:[%s381_s18] sm:$0xff] %v1477_v23  }
 0x165 PF: > { %s17_s26 = sadd.s32 1, %s1533_s26   ;;  %s1802_s24 = smov %s1529_s25 }
 0x166   : > { %p14_p5 = scmp.ge.s32.totalorder %s17_s26, 4   ;;  %s1803_s25 = smov %s1805_s27 }
 0x168   :  { %16 = sbr.rel (!%p14_p5) target bundleno = 2 (0x2), region = 81 }

</bundles_post_ra>
